<compile_context>
chip_gen: v5e
topology: v5e:2x2
jax: 0.10.0
libtpu: 0.0.40
codegen_flags: <defaults>
</compile_context>

<pallas_src>
import functools

import jax
import jax.numpy as jnp
import numpy as np
from jax.experimental import pallas as pl
from jax.experimental.pallas import tpu as pltpu


# ----------------------------------------------------------------------------
# Branch definitions (layer widths, matching the torch module __init__).
# ----------------------------------------------------------------------------
BRANCHES = {
    63:  [63, 53, 48, 48],                  # relation_embedding_{1,2,3}
    69:  [69, 59, 48, 48],                  # projection_embedding_{1,2,3}
    112: [112, 98, 80, 64, 48],             # selection_embedding_{1..4}
    203: [203, 175, 150, 128, 80, 48],      # join_embedding_{1..5}
}

OUT_DIM = 48          # every branch ends in a 48-wide layer
_SUBLANE = 8
_LANE = 128
_MAX_TILE_M = 128     # batch tile (M) — near-linear MXU throughput up to here
# Pre-activation value fed to the constant lane; tanh(64.0) == 1.0 exactly in
# f32, so the constant lane re-materializes an exact 1.0 after every tanh.
_CONST_GAIN = 64.0


def _pad_to(n, m):
    return ((n + m - 1) // m) * m


# ----------------------------------------------------------------------------
# Pallas kernel: chained (tile_m x K) @ (K x N) matmuls with tanh between
# layers.  Biases are already folded into the weights (constant-lane trick),
# so the kernel is pure matmul + tanh.
# ----------------------------------------------------------------------------
def _make_mlp_kernel(num_layers):
    def kernel(*refs):
        x_ref = refs[0]
        w_refs = refs[1:1 + num_layers]
        out_ref = refs[1 + num_layers]

        h = x_ref[...]  # (tile_m, in_pad) f32
        for i in range(num_layers):
            h = jnp.dot(h, w_refs[i][...],
                        preferred_element_type=jnp.float32,
                        precision=jax.lax.Precision.HIGHEST)
            if i < num_layers - 1:
                h = jnp.tanh(h)
        out_ref[...] = h

    return kernel


# ----------------------------------------------------------------------------
# Jitted forward: pads the batch once (inside the jit), runs one pallas_call
# over a batch-tile grid, slices the valid outputs.  Weights arrive already
# padded / bias-folded (cached in params), so no per-call parameter work.
# ----------------------------------------------------------------------------
@functools.partial(jax.jit, static_argnames=("tile_m",))
def _forward_impl(batch, weights, *, tile_m):
    b, length = batch.shape
    num_layers = len(weights)
    in_pad = weights[0].shape[0]
    out_pad = weights[-1].shape[1]
    const_in = in_pad - 1            # constant lane of the input activation

    m_pad = _pad_to(b, tile_m)
    grid_m = m_pad // tile_m

    x_pad = jnp.zeros((m_pad, in_pad), jnp.float32)
    x_pad = x_pad.at[:b, :length].set(batch)
    x_pad = x_pad.at[:b, const_in].set(1.0)   # exact 1.0 drives the bias rows

    kernel = _make_mlp_kernel(num_layers)
    in_specs = [pl.BlockSpec((tile_m, in_pad), lambda i: (i, 0))]
    for w in weights:
        # Full-array block, constant index_map -> weight stays resident in
        # VMEM across all batch-tile grid steps (no re-DMA).
        in_specs.append(pl.BlockSpec(w.shape, lambda i: (0, 0)))
    out_specs = pl.BlockSpec((tile_m, out_pad), lambda i: (i, 0))

    out = pl.pallas_call(
        kernel,
        out_shape=jax.ShapeDtypeStruct((m_pad, out_pad), jnp.float32),
        grid=(grid_m,),
        in_specs=in_specs,
        out_specs=out_specs,
        compiler_params=pltpu.CompilerParams(
            # Batch tiles are independent -> "parallel": lets v7x shard the
            # grid across its two TensorCores (no-op on v5e/v6e).
            dimension_semantics=("parallel",)),
    )(x_pad, *weights)

    return out[:b, :OUT_DIM]


# ----------------------------------------------------------------------------
# Parameter construction (deterministic, synthetic).  Padding + bias folding
# happen HERE, once, so forward calls do zero parameter re-packing.
# ----------------------------------------------------------------------------
def init_params(key):
    """Returns {branch_len: {"raw": [(W,b),...], "weights_aug": (W_aug,...)}}."""
    params = {}
    for length, widths in BRANCHES.items():
        num_layers = len(widths) - 1
        # Activations 0..L-1 carry a constant lane -> pad (width + 1) up to a
        # lane multiple; the final output needs no constant lane.
        act_pad = [_pad_to(w + 1, _LANE) for w in widths[:-1]]
        act_pad.append(_pad_to(widths[-1], _LANE))
        const_idx = [p - 1 for p in act_pad[:-1]]

        raw, weights_aug = [], []
        for i, (fan_in, fan_out) in enumerate(zip(widths[:-1], widths[1:])):
            key, kw, kb = jax.random.split(key, 3)
            bound = 1.0 / np.sqrt(fan_in)
            # PyTorch Linear stores (out, in); we store transposed (in, out).
            w = jax.random.uniform(kw, (fan_in, fan_out), jnp.float32,
                                   -bound, bound)
            b = jax.random.uniform(kb, (fan_out,), jnp.float32, -bound, bound)
            raw.append((w, b))

            in_p, out_p = act_pad[i], act_pad[i + 1]
            w_aug = jnp.zeros((in_p, out_p), jnp.float32)
            w_aug = w_aug.at[:fan_in, :fan_out].set(w)
            # Bias row: the input constant lane is exactly 1.0, so this adds b.
            w_aug = w_aug.at[const_idx[i], :fan_out].set(b)
            if i < num_layers - 1:
                # Propagate the constant: pre-activation = 64 -> tanh -> 1.0.
                w_aug = w_aug.at[const_idx[i], const_idx[i + 1]].set(_CONST_GAIN)
            weights_aug.append(w_aug)

        params[length] = {
            "raw": tuple(raw),
            "weights_aug": tuple(jax.device_put(w) for w in weights_aug),
        }
    return params


# ----------------------------------------------------------------------------
# Public forward: accepts a single node (any shape flattening to a branch
# length, matching torch's x.view(-1)) or a (B, L) batch of same-length nodes.
# ----------------------------------------------------------------------------
def node_embedding_forward(x, params):
    x = jnp.asarray(x, jnp.float32)
    if int(x.size) in BRANCHES:                       # single node
        batch, single = jnp.reshape(x, (1, -1)), True
    elif x.ndim == 2 and int(x.shape[1]) in BRANCHES:  # batch of nodes
        batch, single = x, False
    else:
        raise ValueError(f"Unexpected input shape {x.shape}.")

    entry = params[int(batch.shape[1])]
    tile_m = min(_MAX_TILE_M, _pad_to(int(batch.shape[0]), _SUBLANE))
    out = _forward_impl(batch, entry["weights_aug"], tile_m=tile_m)
    return out[0] if single else out


def node_embedding_reference(x, params):
    """Pure-JAX reference (mirrors the PyTorch forward in eval mode)."""
    x = jnp.asarray(x, jnp.float32)
    if int(x.size) in BRANCHES:
        batch, single = jnp.reshape(x, (1, -1)), True
    else:
        batch, single = x, False
    layers = params[int(batch.shape[1])]["raw"]
    h = batch
    for i, (w, b) in enumerate(layers):
        h = jnp.dot(h, w, precision=jax.lax.Precision.HIGHEST) + b
        if i < len(layers) - 1:
            h = jnp.tanh(h)
    return h[0] if single else h


# ----------------------------------------------------------------------------
# Main
# ----------------------------------------------------------------------------
if __name__ == "__main__":
    key = jax.random.PRNGKey(0)
    params = init_params(key)

    ok = True

    # Single-node forwards (matches the torch module's x.view(-1) path).
    for length in (63, 69, 112, 203):
        key, kx = jax.random.split(key)
        x = jax.random.normal(kx, (1, length), jnp.float32)
        out = jax.block_until_ready(node_embedding_forward(x, params))
        ref = node_embedding_reference(x, params)
        ok &= (out.shape == (OUT_DIM,))
        ok &= bool(np.allclose(np.asarray(out), np.asarray(ref),
                               rtol=1e-5, atol=1e-5))

    # Batched forwards: many nodes of one type in a single pallas_call; the
    # 203-branch batch of 256 exercises a multi-step "parallel" grid (tile 128).
    for length, bsz in ((63, 16), (112, 32), (203, 256)):
        key, kx = jax.random.split(key)
        xb = jax.random.normal(kx, (bsz, length), jnp.float32)
        outb = jax.block_until_ready(node_embedding_forward(xb, params))
        refb = node_embedding_reference(xb, params)
        ok &= (outb.shape == (bsz, OUT_DIM))
        ok &= bool(np.allclose(np.asarray(outb), np.asarray(refb),
                               rtol=1e-5, atol=1e-5))

    print("KERNEL_OK" if ok else "KERNEL_MISMATCH")
</pallas_src>

<mosaic_0001>
module attributes {stable_mosaic.version = 11 : i64} {
  func.func @kernel(%arg0: i32, %arg1: memref<8x128xf32, #tpu.memory_space<vmem>>, %arg2: memref<128x128xf32, #tpu.memory_space<vmem>>, %arg3: memref<128x128xf32, #tpu.memory_space<vmem>>, %arg4: memref<128x128xf32, #tpu.memory_space<vmem>>, %arg5: memref<8x128xf32, #tpu.memory_space<vmem>>) attributes {dimension_semantics = [#tpu.dimension_semantics<parallel>], iteration_bounds = array<i64: 1>, scalar_prefetch = 0 : i64, scratch_operands = 0 : i64, tpu.core_type = #tpu.core_type<tc>, window_params = [{transform_indices = @transform_0, window_bounds = array<i64: 8, 128>}, {pipeline_mode = #tpu.pipeline_mode<synchronous>, transform_indices = @transform_1, window_bounds = array<i64: 128, 128>}, {pipeline_mode = #tpu.pipeline_mode<synchronous>, transform_indices = @transform_2, window_bounds = array<i64: 128, 128>}, {pipeline_mode = #tpu.pipeline_mode<synchronous>, transform_indices = @transform_3, window_bounds = array<i64: 128, 128>}, {transform_indices = @transform_4, window_bounds = array<i64: 8, 128>}]} {
    %c0 = arith.constant 0 : index
    %c0_0 = arith.constant 0 : index
    %0 = vector.load %arg1[%c0, %c0_0] : memref<8x128xf32, #tpu.memory_space<vmem>>, vector<8x128xf32>
    %c0_1 = arith.constant 0 : index
    %c0_2 = arith.constant 0 : index
    %1 = vector.load %arg2[%c0_1, %c0_2] : memref<128x128xf32, #tpu.memory_space<vmem>>, vector<128x128xf32>
    %cst = arith.constant dense<0.000000e+00> : vector<8x128xf32>
    %2 = tpu.matmul %0, %1, %cst {dimension_numbers = #tpu.dot_dimension_numbers<[1], [0], [0], [1], [0, 0, 1, 1], [], []>, precision = #tpu.contract_precision<fp32>} : vector<8x128xf32>, vector<128x128xf32>, vector<8x128xf32> -> vector<8x128xf32>
    %3 = math.tanh %2 : vector<8x128xf32>
    %c0_3 = arith.constant 0 : index
    %c0_4 = arith.constant 0 : index
    %4 = vector.load %arg3[%c0_3, %c0_4] : memref<128x128xf32, #tpu.memory_space<vmem>>, vector<128x128xf32>
    %cst_5 = arith.constant dense<0.000000e+00> : vector<8x128xf32>
    %5 = tpu.matmul %3, %4, %cst_5 {dimension_numbers = #tpu.dot_dimension_numbers<[1], [0], [0], [1], [0, 0, 1, 1], [], []>, precision = #tpu.contract_precision<fp32>} : vector<8x128xf32>, vector<128x128xf32>, vector<8x128xf32> -> vector<8x128xf32>
    %6 = math.tanh %5 : vector<8x128xf32>
    %c0_6 = arith.constant 0 : index
    %c0_7 = arith.constant 0 : index
    %7 = vector.load %arg4[%c0_6, %c0_7] : memref<128x128xf32, #tpu.memory_space<vmem>>, vector<128x128xf32>
    %cst_8 = arith.constant dense<0.000000e+00> : vector<8x128xf32>
    %8 = tpu.matmul %6, %7, %cst_8 {dimension_numbers = #tpu.dot_dimension_numbers<[1], [0], [0], [1], [0, 0, 1, 1], [], []>, precision = #tpu.contract_precision<fp32>} : vector<8x128xf32>, vector<128x128xf32>, vector<8x128xf32> -> vector<8x128xf32>
    %c0_9 = arith.constant 0 : index
    %c0_10 = arith.constant 0 : index
    %9 = vector.load %arg5[%c0_9, %c0_10] : memref<8x128xf32, #tpu.memory_space<vmem>>, vector<8x128xf32>
    tpu.vector_store %arg5[%c0_9, %c0_10], %8 {strides = array<i32>} : memref<8x128xf32, #tpu.memory_space<vmem>>, vector<8x128xf32>,
    return
  }
  func.func @transform_0(%arg0: i32) -> (i32, i32) {
    %c0_i32 = arith.constant 0 : i32
    %c0_i32_0 = arith.constant 0 : i32
    return %arg0, %c0_i32 : i32, i32
  }
  func.func @transform_1(%arg0: i32) -> (i32, i32) {
    %c0_i32 = arith.constant 0 : i32
    %c0_i32_0 = arith.constant 0 : i32
    %c0_i32_1 = arith.constant 0 : i32
    return %c0_i32, %c0_i32_0 : i32, i32
  }
  func.func @transform_2(%arg0: i32) -> (i32, i32) {
    %c0_i32 = arith.constant 0 : i32
    %c0_i32_0 = arith.constant 0 : i32
    %c0_i32_1 = arith.constant 0 : i32
    return %c0_i32, %c0_i32_0 : i32, i32
  }
  func.func @transform_3(%arg0: i32) -> (i32, i32) {
    %c0_i32 = arith.constant 0 : i32
    %c0_i32_0 = arith.constant 0 : i32
    %c0_i32_1 = arith.constant 0 : i32
    return %c0_i32, %c0_i32_0 : i32, i32
  }
  func.func @transform_4(%arg0: i32) -> (i32, i32) {
    %c0_i32 = arith.constant 0 : i32
    %c0_i32_0 = arith.constant 0 : i32
    return %arg0, %c0_i32 : i32, i32
  }
}

</mosaic_0001>

<bundles_post_ra>
// kernel: _forward_impl.1
= control target key start
LH: loop header
LB: loop body
LE: loop exit
PB: predicated region body
PF: predicated region fallthrough
CT: control target
= control target key end

     0   :  { %9 = vsyncpa [#allocation3], 0  ;;  %s1939_s0 = inlined_call_operand.vmem [shape: f32[8,128], index: 0, kind: input, shape index: {}]   ;;  %s1940_s1 = inlined_call_operand.hbm [shape: f32[128,128], index: 1, kind: input, shape index: {}]   ;;  %s1941_s2 = inlined_call_operand.hbm [shape: f32[128,128], index: 2, kind: input, shape index: {}]   ;;  %s1942_s3 = inlined_call_operand.hbm [shape: f32[128,128], index: 3, kind: input, shape index: {}]   ;;  %s1943_s4 = inlined_call_operand.vmem [shape: f32[8,128], index: 4, kind: output, shape index: {}]  }
   0x1   :  { %10 = vsyncpa [#allocation5], 0  ;;  %s30_s17 = sshll.u32 %s1941_s2, 4  ;;  %s1230_s18 = smov [#allocation4]   ;;  %s31_s17 = int_to_ptr.hbm [resolvable:$true] %s30_s17 }
   0x2   :  { %s32_s19 = sshll.u32 %s1230_s18, 4  ;;  %s17_s22 = sshll.u32 %s1940_s1, 4  ;;  %s33_s19 = int_to_ptr.vmem [resolvable:$true] %s32_s19  ;;  %s18_s22 = int_to_ptr.hbm [resolvable:$true] %s17_s22 }
   0x3   :  { %s1231_s23 = smov 128   ;;  %s1232_s24 = smov 8  }
   0x4   :  { %38 = dma.hbm_to_vmem [thread:$0]  %s31_s17, 2048, %s33_s19, [#allocation5], %s1231_s23, %s1231_s23, %s1232_s24  }
   0x5   :  { %s1233_s25 = smov [#allocation2]   ;;  %s43_s29 = sshll.u32 %s1942_s3, 4  ;;  %s44_s29 = int_to_ptr.hbm [resolvable:$true] %s43_s29 }
   0x6   :  { %s19_s26 = sshll.u32 %s1233_s25, 4  ;;  %s1234_s2 = smov [#allocation6]   ;;  %s20_s26 = int_to_ptr.vmem [resolvable:$true] %s19_s26 }
   0x7   :  { %25 = dma.hbm_to_vmem [thread:$0]  %s18_s22, 2048, %s20_s26, [#allocation3], %s1231_s23, %s1231_s23, %s1232_s24  }
   0x8   :  { %s45_s30 = sshll.u32 %s1234_s2, 4  ;;  %s46_s30 = int_to_ptr.vmem [resolvable:$true] %s45_s30 }
   0x9   :  { %51 = dma.hbm_to_vmem [thread:$0]  %s44_s29, 2048, %s46_s30, [#allocation5], %s1231_s23, %s1231_s23, %s1232_s24  }
   0xa   :  { %1226 = dma.done.wait [#allocation3], 2048  }
   0xb   :  { %1227 = vsyncadd [#allocation3], 4294965248 }
   0xc   :  { %1228 = dma.done.wait [#allocation5], 4096  }
   0xd   :  { %1229 = vsyncadd [#allocation5], 4294963200  ;;  %v80_v0 = vld [vmem:[#allocation2 + $0x78] sm:$0xff]  ;;  %v79_v1 = vld [vmem:[#allocation2 + $0x70] sm:$0xff] }
   0xe   :  { %v78_v2 = vld [vmem:[#allocation2 + $0x68] sm:$0xff]  ;;  %v1269_v3 = vand.u32 4294901760, %v80_v0  ;;  %v1271_v4 = vand.u32 4294901760, %v79_v1  ;;  %v77_v6 = vld [vmem:[#allocation2 + $0x60] sm:$0xff]  ;;  %v76_v7 = vld [vmem:[#allocation2 + $0x58] sm:$0xff] }
   0xf   :  { %v1273_v5 = vand.u32 4294901760, %v78_v2  ;;  %v75_v8 = vld [vmem:[#allocation2 + $0x50] sm:$0xff]  ;;  %v1275_v9 = vand.u32 4294901760, %v77_v6  ;;  %v1277_v10 = vand.u32 4294901760, %v76_v7  ;;  %v74_v12 = vld [vmem:[#allocation2 + $0x48] sm:$0xff]  ;;  %v73_v13 = vld [vmem:[#allocation2 + $0x40] sm:$0xff] }
  0x10   :  { %v1279_v11 = vand.u32 4294901760, %v75_v8  ;;  %82 = vmatpush.msra.mxu0 %v1269_v3  ;;  %v1283_v14 = vsub.f32 %v80_v0, %v1269_v3  ;;  %v1286_v15 = vsub.f32 %v79_v1, %v1271_v4  ;;  %v1291_v17 = vand.u32 4294901760, %v74_v12  ;;  %v72_v18 = vld [vmem:[#allocation2 + $0x38] sm:$0xff]  ;;  %278 = vmatpush.msra.mxu3 %v1269_v3  ;;  %v71_v26 = vld [vmem:[#allocation2 + $0x30] sm:$0xff]  ;;  %v70_v36 = vld [vmem:[#allocation2 + $0x28] sm:$0xff] }
  0x11   :  { %v1289_v16 = vsub.f32 %v78_v2, %v1273_v5  ;;  %v1295_v19 = vsub.f32 %v77_v6, %v1275_v9  ;;  %v1298_v20 = vsub.f32 %v76_v7, %v1277_v10  ;;  %v1307_v25 = vand.u32 4294901760, %v73_v13  ;;  %v69_v42 = vld [vmem:[#allocation2 + $0x20] sm:$0xff]  ;;  %v68_v47 = vld [vmem:[#allocation2 + $0x18] sm:$0xff]  ;;  %v67_v55 = vld [vmem:[#allocation2 + $0x10] sm:$0xff] }
  0x12   :  { %v1301_v21 = vsub.f32 %v75_v8, %v1279_v11  ;;  %84 = vmatpush.msra.mxu0 %v1271_v4  ;;  %v124_v22 = vand.u32 4294901760, %v1283_v14  ;;  %v130_v23 = vand.u32 4294901760, %v1286_v15  ;;  %225 = vmatpush.msra.mxu2 %v1283_v14  ;;  %v1311_v28 = vand.u32 4294901760, %v72_v18  ;;  %v66_v60 = vld [vmem:[#allocation2 + $0x8] sm:$0xff]  ;;  %v65_v1 = vld [vmem:[#allocation2] sm:$0xff] }
  0x13   :  { %v136_v24 = vand.u32 4294901760, %v1289_v16  ;;  %v142_v27 = vand.u32 4294901760, %v1295_v19  ;;  %v1314_v29 = vsub.f32 %v74_v12, %v1291_v17  ;;  %280 = vmatpush.msra.mxu3 %v1271_v4  ;;  %v148_v33 = vand.u32 4294901760, %v1298_v20  ;;  %v64_v7 = vld [vmem:[%s1939_s0] sm:$0xff] }
  0x14   :  { %86 = vmatpush.msra.mxu0 %v1273_v5  ;;  %v125_v30 = vsub.f32 %v1283_v14, %v124_v22  ;;  %v131_v31 = vsub.f32 %v1286_v15, %v130_v23  ;;  %228 = vmatpush.msra.mxu2 %v1286_v15  ;;  %v154_v34 = vand.u32 4294901760, %v1301_v21  ;;  %v1330_v35 = vand.u32 4294901760, %v71_v26  ;;  %v438_v14 = vld [vmem:[#allocation4 + $0x78] sm:$0xff] }
  0x15   :  { %v137_v32 = vsub.f32 %v1289_v16, %v136_v24  ;;  %282 = vmatpush.msra.mxu3 %v1273_v5  ;;  %v143_v39 = vsub.f32 %v1295_v19, %v142_v27  ;;  %v1338_v40 = vsub.f32 %v73_v13, %v1307_v25  ;;  %v160_v41 = vand.u32 4294901760, %v1314_v29 }
  0x16   :  { %v126_v37 = vand.u32 4294901760, %v125_v30  ;;  %88 = vmatpush.msra.mxu0 %v1275_v9  ;;  %v132_v38 = vand.u32 4294901760, %v131_v31  ;;  %231 = vmatpush.msra.mxu2 %v1289_v16  ;;  %v149_v44 = vsub.f32 %v1298_v20, %v148_v33  ;;  %v1347_v45 = vand.u32 4294901760, %v70_v36 }
  0x17   :  { %284 = vmatpush.msra.mxu3 %v1275_v9  ;;  %v138_v43 = vand.u32 4294901760, %v137_v32  ;;  %v1350_v46 = vsub.f32 %v72_v18, %v1311_v28  ;;  %v155_v48 = vsub.f32 %v1301_v21, %v154_v34  ;;  %v144_v49 = vand.u32 4294901760, %v143_v39 }
  0x18   :  { %127 = vmatpush.msra.mxu1 %v126_v37  ;;  %90 = vmatpush.msra.mxu0 %v1277_v10  ;;  %v166_v50 = vand.u32 4294901760, %v1338_v40  ;;  %v1359_v51 = vand.u32 4294901760, %v69_v42  ;;  %v1362_v52 = vsub.f32 %v71_v26, %v1330_v35  ;;  %v161_v53 = vsub.f32 %v1314_v29, %v160_v41 }
  0x19   :  { %234 = vmatpush.msra.mxu2 %v1295_v19  ;;  %286 = vmatpush.msra.mxu3 %v1277_v10  ;;  %v1367_v54 = vand.u32 4294901760, %v68_v47  ;;  %v150_v56 = vand.u32 4294901760, %v149_v44  ;;  %v172_v57 = vand.u32 4294901760, %v1350_v46  ;;  %v1374_v58 = vsub.f32 %v70_v36, %v1347_v45 }
  0x1a   :  { %133 = vmatpush.msra.mxu1 %v132_v38  ;;  %92 = vmatpush.msra.mxu0 %v1279_v11  ;;  %v156_v59 = vand.u32 4294901760, %v155_v48  ;;  %v167_v61 = vsub.f32 %v1338_v40, %v166_v50  ;;  %v178_v62 = vand.u32 4294901760, %v1362_v52  ;;  %v1383_v63 = vand.u32 4294901760, %v67_v55 }
  0x1b   :  { %237 = vmatpush.msra.mxu2 %v1298_v20  ;;  %288 = vmatpush.msra.mxu3 %v1279_v11  ;;  %v1386_v0 = vsub.f32 %v69_v42, %v1359_v51  ;;  %v162_v2 = vand.u32 4294901760, %v161_v53  ;;  %v1389_v6 = vsub.f32 %v68_v47, %v1367_v54  ;;  %v173_v8 = vsub.f32 %v1350_v46, %v172_v57 }
  0x1c   :  { %139 = vmatpush.msra.mxu1 %v138_v43  ;;  %94 = vmatpush.msra.mxu0 %v1291_v17  ;;  %v184_v12 = vand.u32 4294901760, %v1374_v58  ;;  %v1401_v13 = vand.u32 4294901760, %v66_v60  ;;  %v1403_v18 = vand.u32 4294901760, %v64_v7  ;;  %v1405_v26 = vand.u32 4294901760, %v65_v1 }
  0x1d   :  { %240 = vmatpush.msra.mxu2 %v1301_v21  ;;  %290 = vmatpush.msra.mxu3 %v1291_v17  ;;  %v168_v30 = vand.u32 4294901760, %v167_v61  ;;  %v179_v31 = vsub.f32 %v1362_v52, %v178_v62  ;;  %v190_v32 = vand.u32 4294901760, %v1386_v0  ;;  %v1415_v36 = vsub.f32 %v67_v55, %v1383_v63 }
  0x1e   :  { %145 = vmatpush.msra.mxu1 %v144_v49  ;;  %96 = vmatpush.msra.mxu0 %v1307_v25  ;;  %v196_v37 = vand.u32 4294901760, %v1389_v6  ;;  %v174_v38 = vand.u32 4294901760, %v173_v8  ;;  %v185_v39 = vsub.f32 %v1374_v58, %v184_v12  ;;  %v1425_v42 = vsub.f32 %v66_v60, %v1401_v13 }
  0x1f   :  { %243 = vmatpush.msra.mxu2 %v1314_v29  ;;  %292 = vmatpush.msra.mxu3 %v1307_v25  ;;  %v114_v43 = vsub.f32 %v64_v7, %v1403_v18  ;;  %v180_v44 = vand.u32 4294901760, %v179_v31  ;;  %v191_v47 = vsub.f32 %v1386_v0, %v190_v32  ;;  %v202_v48 = vand.u32 4294901760, %v1415_v36 }
  0x20   :  { %151 = vmatpush.msra.mxu1 %v150_v56  ;;  %98 = vmatpush.msra.mxu0 %v1311_v28  ;;  %v1436_v49 = vsub.f32 %v65_v1, %v1405_v26  ;;  %v186_v53 = vand.u32 4294901760, %v185_v39  ;;  %v197_v55 = vsub.f32 %v1389_v6, %v196_v37  ;;  %v208_v56 = vand.u32 4294901760, %v1425_v42 }
  0x21   :  { %246 = vmatpush.msra.mxu2 %v1338_v40  ;;  %294 = vmatpush.msra.mxu3 %v1311_v28  ;;  %v192_v60 = vand.u32 4294901760, %v191_v47  ;;  %v203_v61 = vsub.f32 %v1415_v36, %v202_v48  ;;  %v436_v47 = vld [vmem:[#allocation4 + $0x68] sm:$0xff]  ;;  %v1478_v15 = vand.u32 4294901760, %v438_v14  ;;  %v430_v40 = vld [vmem:[#allocation4 + $0x38] sm:$0xff] }
  0x22   :  { %157 = vmatpush.msra.mxu1 %v156_v59  ;;  %100 = vmatpush.msra.mxu0 %v1330_v35  ;;  %v115_v59 = vand.u32 4294901760, %v114_v43  ;;  %v214_v1 = vand.u32 4294901760, %v1436_v49  ;;  %v209_v7 = vsub.f32 %v1425_v42, %v208_v56  ;;  %v1482_v16 = vand.u32 4294901760, %v436_v47 }
  0x23   :  { %249 = vmatpush.msra.mxu2 %v1350_v46  ;;  %296 = vmatpush.msra.mxu3 %v1330_v35  ;;  %v1495_v20 = vsub.f32 %v438_v14, %v1478_v15  ;;  %v428_v14 = vld [vmem:[#allocation4 + $0x28] sm:$0xff]  ;;  %v1557_v46 = vand.u32 4294901760, %v430_v40 }
  0x24   :  { %163 = vmatpush.msra.mxu1 %v162_v2  ;;  %102 = vmatpush.msra.mxu0 %v1347_v45  ;;  %v198_v2 = vand.u32 4294901760, %v197_v55  ;;  %v116_v8 = vsub.f32 %v114_v43, %v115_v59  ;;  %v215_v31 = vsub.f32 %v1436_v49, %v214_v1 }
  0x25   :  { %252 = vmatpush.msra.mxu2 %v1362_v52  ;;  %298 = vmatpush.msra.mxu3 %v1347_v45  ;;  %v482_v21 = vand.u32 4294901760, %v1495_v20  ;;  %v1574_v52 = vsub.f32 %v430_v40, %v1557_v46 }
  0x26   :  { %169 = vmatpush.msra.mxu1 %v168_v30  ;;  %104 = vmatpush.msra.mxu0 %v1359_v51  ;;  %v204_v30 = vand.u32 4294901760, %v203_v61  ;;  %v117_v39 = vand.u32 4294901760, %v116_v8  ;;  %v431_v61 = vld [vmem:[#allocation4 + $0x40] sm:$0xff] }
  0x27   :  { %255 = vmatpush.msra.mxu2 %v1374_v58  ;;  %300 = vmatpush.msra.mxu3 %v1359_v51 }
  0x28   :  { %175 = vmatpush.msra.mxu1 %v174_v38  ;;  %106 = vmatpush.msra.mxu0 %v1367_v54  ;;  %v210_v38 = vand.u32 4294901760, %v209_v7 }
  0x29   :  { %258 = vmatpush.msra.mxu2 %v1386_v0  ;;  %302 = vmatpush.msra.mxu3 %v1367_v54  ;;  %v424_v0 = vld [vmem:[#allocation4 + $0x8] sm:$0xff] }
  0x2a   :  { %181 = vmatpush.msra.mxu1 %v180_v44  ;;  %108 = vmatpush.msra.mxu0 %v1383_v63  ;;  %v216_v44 = vand.u32 4294901760, %v215_v31  ;;  %v1523_v31 = vand.u32 4294901760, %v431_v61 }
  0x2b   :  { %261 = vmatpush.msra.mxu2 %v1389_v6  ;;  %304 = vmatpush.msra.mxu3 %v1383_v63 }
  0x2c   :  { %187 = vmatpush.msra.mxu1 %v186_v53  ;;  %110 = vmatpush.msra.mxu0 %v1401_v13  ;;  %v433_v53 = vld [vmem:[#allocation4 + $0x50] sm:$0xff] }
  0x2d   :  { %264 = vmatpush.msra.mxu2 %v1415_v36  ;;  %306 = vmatpush.msra.mxu3 %v1401_v13  ;;  %v1489_v55 = vand.u32 4294901760, %v433_v53 }
  0x2e   :  { %193 = vmatpush.msra.mxu1 %v192_v60  ;;  %112 = vmatpush.msra.mxu0 %v1405_v26 }
  0x2f   :  { %267 = vmatpush.msra.mxu2 %v1425_v42  ;;  %308 = vmatpush.msra.mxu3 %v1405_v26  ;;  %v1519_v8 = vsub.f32 %v433_v53, %v1489_v55 }
  0x30   :  { %319 = vmatpush.msrb.mxu0 %v124_v22  ;;  %199 = vmatpush.msra.mxu1 %v198_v2  ;;  %v437_v22 = vld [vmem:[#allocation4 + $0x70] sm:$0xff] }
  0x31   :  { %270 = vmatpush.msra.mxu2 %v1436_v49  ;;  %312 = vmatmul.f32.vlgmr.msra.gmra.mxu3 %v115_v59  ;;  %v1501_v59 = vsub.f32 %v436_v47, %v1482_v16 }
  0x32   :  { %323 = vmatpush.msrb.mxu0 %v130_v23  ;;  %205 = vmatpush.msra.mxu1 %v204_v30  ;;  %v1480_v23 = vand.u32 4294901760, %v437_v22 }
  0x33   :  { %273 = vmatmul.f32.vlgmr.msra.gmra.mxu2 %v114_v43  ;;  %118 = vmatmul.f32.vlgmr.msra.gmra.mxu0 %v117_v39  ;;  %v434_v43 = vld [vmem:[#allocation4 + $0x58] sm:$0xff]  ;;  %v494_v7 = vand.u32 4294901760, %v1501_v59 }
  0x34   :  { %327 = vmatpush.msrb.mxu0 %v136_v24  ;;  %211 = vmatpush.msra.mxu1 %v210_v38  ;;  %v435_v24 = vld [vmem:[#allocation4 + $0x60] sm:$0xff] }
  0x35   :  { %v1485_v19 = vand.u32 4294901760, %v435_v24  ;;  %440 = vmatpush.msrb.mxu2 %v1478_v15  ;;  %v495_v38 = vsub.f32 %v1501_v59, %v494_v7 }
  0x36   :  { %331 = vmatpush.msrb.mxu0 %v142_v27  ;;  %217 = vmatpush.msra.mxu1 %v216_v44  ;;  %v1487_v27 = vand.u32 4294901760, %v434_v43  ;;  %v512_v44 = vand.u32 4294901760, %v1519_v8 }
  0x37   :  { %219 = vmatmul.f32.vlgmr.msra.gmra.mxu1 %v1403_v18  ;;  %v1506_v2 = vsub.f32 %v435_v24, %v1485_v19  ;;  %442 = vmatpush.msrb.mxu2 %v1480_v23  ;;  %v1551_v24 = vsub.f32 %v431_v61, %v1523_v31  ;;  %v496_v53 = vand.u32 4294901760, %v495_v38  ;;  %v1565_v61 = vand.u32 4294901760, %v428_v14 }
  0x38   :  { %386 = vmatpush.msrb.mxu1 %v1269_v3  ;;  %335 = vmatpush.msrb.mxu0 %v148_v33  ;;  %v432_v3 = vld [vmem:[#allocation4 + $0x48] sm:$0xff]  ;;  %v1498_v33 = vsub.f32 %v437_v22, %v1480_v23 }
  0x39   :  { %v1503_v60 = vand.u32 4294901760, %v432_v3  ;;  %v500_v30 = vand.u32 4294901760, %v1506_v2  ;;  %444 = vmatpush.msrb.mxu2 %v1482_v16 }
  0x3a   :  { %388 = vmatpush.msrb.mxu1 %v1271_v4  ;;  %339 = vmatpush.msrb.mxu0 %v154_v34  ;;  %v1510_v4 = vsub.f32 %v434_v43, %v1487_v27  ;;  %v488_v34 = vand.u32 4294901760, %v1498_v33  ;;  %v427_v43 = vld [vmem:[#allocation4 + $0x20] sm:$0xff] }
  0x3b   :  { %v501_v47 = vsub.f32 %v1506_v2, %v500_v30  ;;  %446 = vmatpush.msrb.mxu2 %v1485_v19 }
  0x3c   :  { %390 = vmatpush.msrb.mxu1 %v1273_v5  ;;  %343 = vmatpush.msrb.mxu0 %v160_v41  ;;  %v483_v5 = vsub.f32 %v1495_v20, %v482_v21  ;;  %v489_v29 = vsub.f32 %v1498_v33, %v488_v34  ;;  %v1535_v41 = vsub.f32 %v432_v3, %v1503_v60 }
  0x3d   :  { %448 = vmatpush.msrb.mxu2 %v1487_v27 }
  0x3e   :  { %392 = vmatpush.msrb.mxu1 %v1275_v9  ;;  %347 = vmatpush.msrb.mxu0 %v166_v50  ;;  %v506_v9 = vand.u32 4294901760, %v1510_v4  ;;  %v429_v50 = vld [vmem:[#allocation4 + $0x30] sm:$0xff]  ;;  %v484_v39 = vand.u32 4294901760, %v483_v5  ;;  %v490_v22 = vand.u32 4294901760, %v489_v29  ;;  %v502_v5 = vand.u32 4294901760, %v501_v47 }
  0x3f   :  { %v524_v29 = vand.u32 4294901760, %v1551_v24  ;;  %450 = vmatpush.msrb.mxu2 %v1489_v55 }
  0x40   :  { %394 = vmatpush.msrb.mxu1 %v1277_v10  ;;  %351 = vmatpush.msrb.mxu0 %v172_v57  ;;  %v518_v10 = vand.u32 4294901760, %v1535_v41  ;;  %v1559_v57 = vand.u32 4294901760, %v429_v50  ;;  %v507_v3 = vsub.f32 %v1510_v4, %v506_v9 }
  0x41   :  { %485 = vmatpush.msrb.mxu3 %v484_v39  ;;  %v530_v39 = vand.u32 4294901760, %v1574_v52  ;;  %452 = vmatpush.msrb.mxu2 %v1503_v60 }
  0x42   :  { %396 = vmatpush.msrb.mxu1 %v1279_v11  ;;  %355 = vmatpush.msrb.mxu0 %v178_v62  ;;  %v513_v11 = vsub.f32 %v1519_v8, %v512_v44  ;;  %v426_v62 = vld [vmem:[#allocation4 + $0x18] sm:$0xff]  ;;  %v1579_v38 = vsub.f32 %v429_v50, %v1559_v57  ;;  %v519_v58 = vsub.f32 %v1535_v41, %v518_v10  ;;  %v508_v40 = vand.u32 4294901760, %v507_v3 }
  0x43   :  { %491 = vmatpush.msrb.mxu3 %v490_v22  ;;  %v1592_v50 = vsub.f32 %v428_v14, %v1565_v61  ;;  %v1594_v22 = vand.u32 4294901760, %v426_v62  ;;  %454 = vmatpush.msrb.mxu2 %v1523_v31  ;;  %v531_v6 = vsub.f32 %v1574_v52, %v530_v39  ;;  %v1620_v3 = vand.u32 4294901760, %v424_v0 }
  0x44   :  { %398 = vmatpush.msrb.mxu1 %v1291_v17  ;;  %359 = vmatpush.msrb.mxu0 %v184_v12  ;;  %v1581_v17 = vand.u32 4294901760, %v427_v43  ;;  %v425_v12 = vld [vmem:[#allocation4 + $0x10] sm:$0xff]  ;;  %v536_v47 = vand.u32 4294901760, %v1579_v38 }
  0x45   :  { %497 = vmatpush.msrb.mxu3 %v496_v53  ;;  %v1607_v53 = vand.u32 4294901760, %v425_v12  ;;  %456 = vmatpush.msrb.mxu2 %v1557_v46 }
  0x46   :  { %400 = vmatpush.msrb.mxu1 %v1307_v25  ;;  %363 = vmatpush.msrb.mxu0 %v190_v32  ;;  %v514_v25 = vand.u32 4294901760, %v513_v11  ;;  %v525_v32 = vsub.f32 %v1551_v24, %v524_v29  ;;  %v1605_v14 = vsub.f32 %v427_v43, %v1581_v17  ;;  %v1618_v43 = vsub.f32 %v426_v62, %v1594_v22 }
  0x47   :  { %503 = vmatpush.msrb.mxu3 %v502_v5  ;;  %v537_v36 = vsub.f32 %v1579_v38, %v536_v47  ;;  %458 = vmatpush.msrb.mxu2 %v1559_v57  ;;  %v1631_v11 = vsub.f32 %v425_v12, %v1607_v53  ;;  %v1642_v62 = vsub.f32 %v424_v0, %v1620_v3 }
  0x48   :  { %402 = vmatpush.msrb.mxu1 %v1311_v28  ;;  %367 = vmatpush.msrb.mxu0 %v196_v37  ;;  %v520_v28 = vand.u32 4294901760, %v519_v58  ;;  %v542_v37 = vand.u32 4294901760, %v1592_v50 }
  0x49   :  { %509 = vmatpush.msrb.mxu3 %v508_v40  ;;  %460 = vmatpush.msrb.mxu2 %v1565_v61  ;;  %v566_v58 = vand.u32 4294901760, %v1642_v62 }
  0x4a   :  { %404 = vmatpush.msrb.mxu1 %v1330_v35  ;;  %371 = vmatpush.msrb.mxu0 %v202_v48  ;;  %v526_v35 = vand.u32 4294901760, %v525_v32  ;;  %v548_v48 = vand.u32 4294901760, %v1605_v14  ;;  %v543_v42 = vsub.f32 %v1592_v50, %v542_v37 }
  0x4b   :  { %515 = vmatpush.msrb.mxu3 %v514_v25  ;;  %462 = vmatpush.msrb.mxu2 %v1581_v17 }
  0x4c   :  { %406 = vmatpush.msrb.mxu1 %v1347_v45  ;;  %375 = vmatpush.msrb.mxu0 %v208_v56  ;;  %v532_v45 = vand.u32 4294901760, %v531_v6  ;;  %v554_v56 = vand.u32 4294901760, %v1618_v43  ;;  %v549_v49 = vsub.f32 %v1605_v14, %v548_v48  ;;  %v544_v5 = vand.u32 4294901760, %v543_v42  ;;  %v788_v42 = vld [vmem:[#allocation6 + $0x38] sm:$0xff] }
  0x4d   :  { %521 = vmatpush.msrb.mxu3 %v520_v28  ;;  %464 = vmatpush.msrb.mxu2 %v1594_v22 }
  0x4e   :  { %408 = vmatpush.msrb.mxu1 %v1359_v51  ;;  %379 = vmatpush.msrb.mxu0 %v214_v1  ;;  %v538_v51 = vand.u32 4294901760, %v537_v36  ;;  %v560_v1 = vand.u32 4294901760, %v1631_v11  ;;  %v550_v12 = vand.u32 4294901760, %v549_v49 }
  0x4f   :  { %381 = vmatmul.f32.vlgmr.msrb.gmra.mxu0 %v1403_v18  ;;  %527 = vmatpush.msrb.mxu3 %v526_v35 }
  0x50   :  { %410 = vmatpush.msrb.mxu1 %v1367_v54  ;;  %583 = vmatpush.msra.mxu0 %v1495_v20  ;;  %v555_v54 = vsub.f32 %v1618_v43, %v554_v56 }
  0x51   :  { %533 = vmatpush.msrb.mxu3 %v532_v45  ;;  %466 = vmatpush.msrb.mxu2 %v1607_v53 }
  0x52   :  { %412 = vmatpush.msrb.mxu1 %v1383_v63  ;;  %586 = vmatpush.msra.mxu0 %v1498_v33  ;;  %v561_v63 = vsub.f32 %v1631_v11, %v560_v1  ;;  %v556_v40 = vand.u32 4294901760, %v555_v54 }
  0x53   :  { %539 = vmatpush.msrb.mxu3 %v538_v51  ;;  %468 = vmatpush.msrb.mxu2 %v1620_v3 }
  0x54   :  { %414 = vmatpush.msrb.mxu1 %v1401_v13  ;;  %589 = vmatpush.msra.mxu0 %v1501_v59  ;;  %v567_v13 = vsub.f32 %v1642_v62, %v566_v58  ;;  %v562_v25 = vand.u32 4294901760, %v561_v63  ;;  %v796_v59 = vld [vmem:[#allocation6 + $0x78] sm:$0xff] }
  0x55   :  { %545 = vmatpush.msrb.mxu3 %v544_v5 }
  0x56   :  { %416 = vmatpush.msrb.mxu1 %v1405_v26  ;;  %592 = vmatpush.msra.mxu0 %v1506_v2  ;;  %v423_v26 = vld [vmem:[#allocation4] sm:$0xff]  ;;  %v794_v2 = vld [vmem:[#allocation6 + $0x68] sm:$0xff] }
  0x57   :  { %418 = vmatmul.f32.vlgmr.msrb.gmra.mxu1 %v1403_v18  ;;  %551 = vmatpush.msrb.mxu3 %v550_v12  ;;  %v568_v18 = vand.u32 4294901760, %v567_v13  ;;  %v469_v0 = vand.u32 4294901760, %v423_v26  ;;  %v1810_v12 = vand.u32 4294901760, %v788_v42 }
  0x58   :  { %636 = vmatpush.msra.mxu1 %v1478_v15  ;;  %595 = vmatpush.msra.mxu0 %v1510_v4  ;;  %v1743_v4 = vand.u32 4294901760, %v796_v59 }
  0x59   :  { %557 = vmatpush.msrb.mxu3 %v556_v40  ;;  %v571_v32 = vsub.f32 %v423_v26, %v469_v0  ;;  %470 = vmatpush.msrb.mxu2 %v469_v0  ;;  %v1819_v26 = vsub.f32 %v788_v42, %v1810_v12  ;;  %v783_v42 = vld [vmem:[#allocation6 + $0x10] sm:$0xff] }
  0x5a   :  { %638 = vmatpush.msra.mxu1 %v1480_v23  ;;  %598 = vmatpush.msra.mxu0 %v1519_v8  ;;  %v792_v8 = vld [vmem:[#allocation6 + $0x58] sm:$0xff] }
  0x5b   :  { %563 = vmatpush.msrb.mxu3 %v562_v25  ;;  %677 = vmatpush.msra.mxu2 %v482_v21  ;;  %v572_v28 = vand.u32 4294901760, %v571_v32 }
  0x5c   :  { %640 = vmatpush.msra.mxu1 %v1482_v16  ;;  %601 = vmatpush.msra.mxu0 %v1535_v41 }
  0x5d   :  { %569 = vmatpush.msrb.mxu3 %v568_v18  ;;  %681 = vmatpush.msra.mxu2 %v488_v34  ;;  %v573_v6 = vsub.f32 %v571_v32, %v572_v28  ;;  %v1747_v34 = vand.u32 4294901760, %v794_v2 }
  0x5e   :  { %642 = vmatpush.msra.mxu1 %v1485_v19  ;;  %604 = vmatpush.msra.mxu0 %v1551_v24  ;;  %v790_v24 = vld [vmem:[#allocation6 + $0x48] sm:$0xff] }
  0x5f   :  { %685 = vmatpush.msra.mxu2 %v494_v7  ;;  %v574_v35 = vand.u32 4294901760, %v573_v6  ;;  %v793_v7 = vld [vmem:[#allocation6 + $0x60] sm:$0xff] }
  0x60   :  { %644 = vmatpush.msra.mxu1 %v1487_v27  ;;  %607 = vmatpush.msra.mxu0 %v1574_v52  ;;  %v1749_v41 = vand.u32 4294901760, %v793_v7  ;;  %v1765_v52 = vand.u32 4294901760, %v790_v24 }
  0x61   :  { %689 = vmatpush.msra.mxu2 %v500_v30  ;;  %575 = vmatpush.msrb.mxu3 %v574_v35  ;;  %v791_v30 = vld [vmem:[#allocation6 + $0x50] sm:$0xff]  ;;  %v888_v35 = vand.u32 4294901760, %v1819_v26 }
  0x62   :  { %646 = vmatpush.msra.mxu1 %v1489_v55  ;;  %610 = vmatpush.msra.mxu0 %v1579_v38  ;;  %v1768_v38 = vsub.f32 %v793_v7, %v1749_v41 }
  0x63   :  { %744 = vmatpush.msra.mxu3 %v1478_v15  ;;  %693 = vmatpush.msra.mxu2 %v506_v9  ;;  %v1751_v9 = vand.u32 4294901760, %v792_v8 }
  0x64   :  { %648 = vmatpush.msra.mxu1 %v1503_v60  ;;  %613 = vmatpush.msra.mxu0 %v1592_v50 }
  0x65   :  { %746 = vmatpush.msra.mxu3 %v1480_v23  ;;  %697 = vmatpush.msra.mxu2 %v512_v44  ;;  %v1753_v44 = vand.u32 4294901760, %v791_v30 }
  0x66   :  { %650 = vmatpush.msra.mxu1 %v1523_v31  ;;  %616 = vmatpush.msra.mxu0 %v1605_v14 }
  0x67   :  { %748 = vmatpush.msra.mxu3 %v1482_v16  ;;  %701 = vmatpush.msra.mxu2 %v518_v10  ;;  %v789_v10 = vld [vmem:[#allocation6 + $0x40] sm:$0xff] }
  0x68   :  { %652 = vmatpush.msra.mxu1 %v1557_v46  ;;  %619 = vmatpush.msra.mxu0 %v1618_v43  ;;  %v1776_v50 = vand.u32 4294901760, %v789_v10 }
  0x69   :  { %750 = vmatpush.msra.mxu3 %v1485_v19  ;;  %705 = vmatpush.msra.mxu2 %v524_v29 }
  0x6a   :  { %654 = vmatpush.msra.mxu1 %v1559_v57  ;;  %622 = vmatpush.msra.mxu0 %v1631_v11 }
  0x6b   :  { %752 = vmatpush.msra.mxu3 %v1487_v27  ;;  %709 = vmatpush.msra.mxu2 %v530_v39  ;;  %v1774_v39 = vsub.f32 %v791_v30, %v1753_v44  ;;  %v786_v30 = vld [vmem:[#allocation6 + $0x28] sm:$0xff] }
  0x6c   :  { %656 = vmatpush.msra.mxu1 %v1565_v61  ;;  %625 = vmatpush.msra.mxu0 %v1642_v62 }
  0x6d   :  { %754 = vmatpush.msra.mxu3 %v1489_v55  ;;  %713 = vmatpush.msra.mxu2 %v536_v47  ;;  %v870_v45 = vand.u32 4294901760, %v1774_v39 }
  0x6e   :  { %658 = vmatpush.msra.mxu1 %v1581_v17  ;;  %628 = vmatpush.msra.mxu0 %v571_v32 }
  0x6f   :  { %756 = vmatpush.msra.mxu3 %v1503_v60  ;;  %717 = vmatpush.msra.mxu2 %v542_v37  ;;  %v795_v60 = vld [vmem:[#allocation6 + $0x70] sm:$0xff]  ;;  %v858_v37 = vand.u32 4294901760, %v1768_v38  ;;  %v871_v40 = vsub.f32 %v1774_v39, %v870_v45 }
  0x70   :  { %660 = vmatpush.msra.mxu1 %v1594_v22  ;;  %v1745_v21 = vand.u32 4294901760, %v795_v60  ;;  %798 = vmatpush.msrb.mxu0 %v1743_v4 }
  0x71   :  { %758 = vmatpush.msra.mxu3 %v1523_v31  ;;  %721 = vmatpush.msra.mxu2 %v548_v48  ;;  %v859_v49 = vsub.f32 %v1768_v38, %v858_v37 }
  0x72   :  { %662 = vmatpush.msra.mxu1 %v1607_v53  ;;  %800 = vmatpush.msrb.mxu0 %v1745_v21 }
  0x73   :  { %760 = vmatpush.msra.mxu3 %v1557_v46  ;;  %725 = vmatpush.msra.mxu2 %v554_v56  ;;  %v1756_v46 = vsub.f32 %v796_v59, %v1743_v4  ;;  %v787_v56 = vld [vmem:[#allocation6 + $0x30] sm:$0xff]  ;;  %v860_v25 = vand.u32 4294901760, %v859_v49  ;;  %v1888_v49 = vand.u32 4294901760, %v783_v42 }
  0x74   :  { %664 = vmatpush.msra.mxu1 %v1620_v3  ;;  %802 = vmatpush.msrb.mxu0 %v1747_v34  ;;  %v1812_v63 = vand.u32 4294901760, %v787_v56 }
  0x75   :  { %762 = vmatpush.msra.mxu3 %v1559_v57  ;;  %729 = vmatpush.msra.mxu2 %v560_v1  ;;  %v1759_v57 = vsub.f32 %v795_v60, %v1745_v21  ;;  %v840_v47 = vand.u32 4294901760, %v1756_v46  ;;  %v1803_v1 = vsub.f32 %v789_v10, %v1776_v50 }
  0x76   :  { %666 = vmatpush.msra.mxu1 %v469_v0  ;;  %804 = vmatpush.msrb.mxu0 %v1749_v41 }
  0x77   :  { %764 = vmatpush.msra.mxu3 %v1565_v61  ;;  %733 = vmatpush.msra.mxu2 %v566_v58  ;;  %v1762_v61 = vsub.f32 %v794_v2, %v1747_v34  ;;  %v846_v14 = vand.u32 4294901760, %v1759_v57  ;;  %v841_v36 = vsub.f32 %v1756_v46, %v840_v47  ;;  %v882_v18 = vand.u32 4294901760, %v1803_v1 }
  0x78   :  { %806 = vmatpush.msrb.mxu0 %v1751_v9 }
  0x79   :  { %766 = vmatpush.msra.mxu3 %v1581_v17  ;;  %737 = vmatpush.msra.mxu2 %v572_v28  ;;  %v1771_v17 = vsub.f32 %v792_v8, %v1751_v9  ;;  %v847_v48 = vsub.f32 %v1759_v57, %v846_v14  ;;  %v842_v62 = vand.u32 4294901760, %v841_v36 }
  0x7a   :  { %808 = vmatpush.msrb.mxu0 %v1753_v44 }
  0x7b   :  { %768 = vmatpush.msra.mxu3 %v1594_v22  ;;  %v864_v43 = vand.u32 4294901760, %v1771_v17  ;;  %v848_v51 = vand.u32 4294901760, %v847_v48  ;;  %843 = vmatpush.msrb.mxu1 %v842_v62 }
  0x7c   :  { %810 = vmatpush.msrb.mxu0 %v1765_v52 }
  0x7d   :  { %770 = vmatpush.msra.mxu3 %v1607_v53  ;;  %v852_v53 = vand.u32 4294901760, %v1762_v61  ;;  %v865_v5 = vsub.f32 %v1771_v17, %v864_v43  ;;  %849 = vmatpush.msrb.mxu1 %v848_v51 }
  0x7e   :  { %812 = vmatpush.msrb.mxu0 %v1776_v50 }
  0x7f   :  { %772 = vmatpush.msra.mxu3 %v1620_v3  ;;  %v1785_v3 = vsub.f32 %v790_v24, %v1765_v52  ;;  %v853_v11 = vsub.f32 %v1762_v61, %v852_v53  ;;  %v866_v28 = vand.u32 4294901760, %v865_v5  ;;  %v785_v24 = vld [vmem:[#allocation6 + $0x20] sm:$0xff]  ;;  %v782_v5 = vld [vmem:[#allocation6 + $0x8] sm:$0xff] }
  0x80   :  { %814 = vmatpush.msrb.mxu0 %v1810_v12 }
  0x81   :  { %774 = vmatpush.msra.mxu3 %v469_v0  ;;  %v854_v54 = vand.u32 4294901760, %v853_v11  ;;  %v876_v58 = vand.u32 4294901760, %v1785_v3  ;;  %v1823_v0 = vsub.f32 %v787_v56, %v1812_v63 }
  0x82   :  { %816 = vmatpush.msrb.mxu0 %v1812_v63 }
  0x83   :  { %855 = vmatpush.msrb.mxu1 %v854_v54  ;;  %v877_v6 = vsub.f32 %v1785_v3, %v876_v58 }
  0x85   :  { %861 = vmatpush.msrb.mxu1 %v860_v25  ;;  %v917_v25 = vsub.f32 %v783_v42, %v1888_v49 }
  0x87   :  { %867 = vmatpush.msrb.mxu1 %v866_v28  ;;  %v781_v28 = vld [vmem:[#allocation6] sm:$0xff] }
  0xb0   :  { %v119_v23 = vpop.f32.mrf.mxu0 }
  0xb4   :  { %v220_v15 = vpop.f32.mrf.mxu1  ;;  %v313_v55 = vpop.f32.mrf.mxu3 }
  0xb5   :  { %v221_v16 = vadd.f32 %v220_v15, %v119_v23  ;;  %v872_v23 = vand.u32 4294901760, %v871_v40 }
  0xb6   :  { %v274_v19 = vpop.f32.mrf.mxu2 }
  0xb7   :  { %v275_v27 = vadd.f32 %v274_v19, %v221_v16  ;;  %v883_v16 = vsub.f32 %v1803_v1, %v882_v18  ;;  %v894_v19 = vand.u32 4294901760, %v1823_v0  ;;  %873 = vmatpush.msrb.mxu1 %v872_v23  ;;  %v918_v23 = vand.u32 4294901760, %v917_v25 }
  0xb9   :  { %v314_v20 = vadd.f32 %v313_v55, %v275_v27  ;;  %v878_v55 = vand.u32 4294901760, %v877_v6  ;;  %v884_v59 = vand.u32 4294901760, %v883_v16  ;;  %v895_v60 = vsub.f32 %v1823_v0, %v894_v19 }
  0xba   :  { %v827_v16 = vand.u32 4294901760, %v781_v28 }
  0xbb   :  { %879 = vmatpush.msrb.mxu1 %v878_v55  ;;  %v896_v8 = vand.u32 4294901760, %v895_v60 }
  0xbd   :  { %885 = vmatpush.msrb.mxu1 %v884_v59 }
  0xcc   :  { %v382_v33 = vpop.f32.mrf.mxu0 }
  0xcd   :  { %v383_v31 = vadd.f32 %v382_v33, %v314_v20  ;;  %v889_v20 = vsub.f32 %v1819_v26, %v888_v35 }
  0xcf   :  { %v890_v7 = vand.u32 4294901760, %v889_v20  ;;  %v919_v20 = vsub.f32 %v917_v25, %v918_v23 }
  0xd1   :  { %891 = vmatpush.msrb.mxu1 %v890_v7  ;;  %v920_v60 = vand.u32 4294901760, %v919_v20 }
  0xd3   :  { %897 = vmatpush.msrb.mxu1 %v896_v8 }
  0xd4   :  { %v419_v29 = vpop.f32.mrf.mxu1 }
  0xd5   :  { %v420_v22 = vadd.f32 %v419_v29, %v383_v31  ;;  %v1863_v31 = vand.u32 4294901760, %v786_v30  ;;  %v1868_v29 = vand.u32 4294901760, %v785_v24 }
  0xd7   :  { %1150 = vtanh.f32 %v420_v22  ;;  %v1866_v10 = vsub.f32 %v786_v30, %v1863_v31  ;;  %818 = vmatpush.msrb.mxu0 %v1863_v31  ;;  %v784_v22 = vld [vmem:[#allocation6 + $0x18] sm:$0xff]  ;;  %v1874_v48 = vsub.f32 %v785_v24, %v1868_v29 }
  0xd8   :  { %v1876_v11 = vand.u32 4294901760, %v784_v22 }
  0xd9   :  { %v900_v36 = vand.u32 4294901760, %v1866_v10  ;;  %820 = vmatpush.msrb.mxu0 %v1868_v29  ;;  %v906_v62 = vand.u32 4294901760, %v1874_v48 }
  0xda   :  { %v1886_v51 = vsub.f32 %v784_v22, %v1876_v11 }
  0xdb   :  { %v901_v56 = vsub.f32 %v1866_v10, %v900_v36  ;;  %822 = vmatpush.msrb.mxu0 %v1876_v11  ;;  %v907_v40 = vsub.f32 %v1874_v48, %v906_v62 }
  0xdd   :  { %v1151_v13 = vpop.eup %1150  ;;  %v902_v54 = vand.u32 4294901760, %v901_v56  ;;  %824 = vmatpush.msrb.mxu0 %v1888_v49  ;;  %v908_v6 = vand.u32 4294901760, %v907_v40 }
  0xde   :  { %v471_v32 = vand.u32 4294901760, %v1151_v13 }
  0xdf   :  { %903 = vmatpush.msrb.mxu1 %v902_v54 }
  0xe0   :  { %577 = vmatmul.f32.vlgmr.msrb.gmra.mxu3 %v471_v32  ;;  %v472_v15 = vsub.f32 %v1151_v13, %v471_v32  ;;  %v912_v13 = vand.u32 4294901760, %v1886_v51 }
  0xe1   :  { %994 = vmatpush.msrb.mxu3 %v1743_v4  ;;  %909 = vmatpush.msrb.mxu1 %v908_v6 }
  0xe2   :  { %631 = vmatmul.f32.vlgmr.msra.gmra.mxu0 %v472_v15  ;;  %v473_v27 = vand.u32 4294901760, %v472_v15 }
  0xe3   :  { %996 = vmatpush.msrb.mxu3 %v1745_v21 }
  0xe4   :  { %670 = vmatmul.f32.vlgmr.msra.gmra.mxu1 %v473_v27  ;;  %v474_v33 = vsub.f32 %v472_v15, %v473_v27  ;;  %v913_v15 = vsub.f32 %v1886_v51, %v912_v13 }
  0xe5   :  { %998 = vmatpush.msrb.mxu3 %v1747_v34 }
  0xe6   :  { %v475_v2 = vand.u32 4294901760, %v474_v33  ;;  %v914_v55 = vand.u32 4294901760, %v913_v15  ;;  %v929_v33 = vsub.f32 %v781_v28, %v827_v16 }
  0xe7   :  { %1000 = vmatpush.msrb.mxu3 %v1749_v41 }
  0xe8   :  { %476 = vmatmul.f32.vlgmr.msrb.gmra.mxu2 %v475_v2  ;;  %776 = vmatmul.f32.vlgmr.msra.gmra.mxu3 %v471_v32  ;;  %v930_v2 = vand.u32 4294901760, %v929_v33 }
  0xe9   :  { %941 = vmatpush.msrb.mxu2 %v1756_v46  ;;  %1002 = vmatpush.msrb.mxu3 %v1751_v9 }
  0xea   :  { %915 = vmatpush.msrb.mxu1 %v914_v55  ;;  %v931_v8 = vsub.f32 %v929_v33, %v930_v2 }
  0xeb   :  { %944 = vmatpush.msrb.mxu2 %v1759_v57  ;;  %1004 = vmatpush.msrb.mxu3 %v1753_v44 }
  0xec   :  { %921 = vmatpush.msrb.mxu1 %v920_v60  ;;  %v932_v24 = vand.u32 4294901760, %v931_v8 }
  0xed   :  { %947 = vmatpush.msrb.mxu2 %v1762_v61  ;;  %1006 = vmatpush.msrb.mxu3 %v1765_v52 }
  0xef   :  { %950 = vmatpush.msrb.mxu2 %v1768_v38  ;;  %1008 = vmatpush.msrb.mxu3 %v1776_v50 }
  0xf0   :  { %739 = vmatmul.f32.vlgmr.msra.gmra.mxu2 %v471_v32  ;;  %v825_v32 = vand.u32 4294901760, %v782_v5 }
  0xf1   :  { %953 = vmatpush.msrb.mxu2 %v1771_v17  ;;  %1010 = vmatpush.msrb.mxu3 %v1810_v12 }
  0xf2   :  { %v923_v27 = vsub.f32 %v782_v5, %v825_v32  ;;  %826 = vmatpush.msrb.mxu0 %v825_v32 }
  0xf3   :  { %956 = vmatpush.msrb.mxu2 %v1774_v39  ;;  %1012 = vmatpush.msrb.mxu3 %v1812_v63 }
  0xf4   :  { %v924_v59 = vand.u32 4294901760, %v923_v27  ;;  %828 = vmatpush.msrb.mxu0 %v827_v16 }
  0xf5   :  { %959 = vmatpush.msrb.mxu2 %v1785_v3  ;;  %1014 = vmatpush.msrb.mxu3 %v1863_v31 }
  0xf6   :  { %1035 = vmatpush.msra.mxu0 %v840_v47  ;;  %v925_v7 = vsub.f32 %v923_v27, %v924_v59 }
  0xf7   :  { %962 = vmatpush.msrb.mxu2 %v1803_v1  ;;  %1016 = vmatpush.msrb.mxu3 %v1868_v29 }
  0xf8   :  { %1039 = vmatpush.msra.mxu0 %v846_v14  ;;  %v926_v30 = vand.u32 4294901760, %v925_v7 }
  0xf9   :  { %965 = vmatpush.msrb.mxu2 %v1819_v26  ;;  %1018 = vmatpush.msrb.mxu3 %v1876_v11 }
  0xfa   :  { %1043 = vmatpush.msra.mxu0 %v852_v53  ;;  %927 = vmatpush.msrb.mxu1 %v926_v30 }
  0xfb   :  { %968 = vmatpush.msrb.mxu2 %v1823_v0  ;;  %1020 = vmatpush.msrb.mxu3 %v1888_v49 }
  0xfc   :  { %1047 = vmatpush.msra.mxu0 %v858_v37  ;;  %933 = vmatpush.msrb.mxu1 %v932_v24 }
  0xfd   :  { %971 = vmatpush.msrb.mxu2 %v1866_v10  ;;  %1022 = vmatpush.msrb.mxu3 %v825_v32 }
  0xfe   :  { %1102 = vmatpush.msra.mxu1 %v1743_v4  ;;  %1051 = vmatpush.msra.mxu0 %v864_v43 }
  0xff   :  { %974 = vmatpush.msrb.mxu2 %v1874_v48  ;;  %1024 = vmatpush.msrb.mxu3 %v827_v16 }
 0x100   :  { %1104 = vmatpush.msra.mxu1 %v1745_v21  ;;  %1055 = vmatpush.msra.mxu0 %v870_v45 }
 0x101   :  { %977 = vmatpush.msrb.mxu2 %v1886_v51 }
 0x102   :  { %1106 = vmatpush.msra.mxu1 %v1747_v34  ;;  %1059 = vmatpush.msra.mxu0 %v876_v58 }
 0x103   :  { %980 = vmatpush.msrb.mxu2 %v917_v25 }
 0x104   :  { %1108 = vmatpush.msra.mxu1 %v1749_v41  ;;  %1063 = vmatpush.msra.mxu0 %v882_v18 }
 0x105   :  { %983 = vmatpush.msrb.mxu2 %v923_v27 }
 0x106   :  { %1110 = vmatpush.msra.mxu1 %v1751_v9  ;;  %1067 = vmatpush.msra.mxu0 %v888_v35 }
 0x107   :  { %986 = vmatpush.msrb.mxu2 %v929_v33 }
 0x108   :  { %1112 = vmatpush.msra.mxu1 %v1753_v44  ;;  %1071 = vmatpush.msra.mxu0 %v894_v19 }
 0x10a   :  { %1114 = vmatpush.msra.mxu1 %v1765_v52  ;;  %1075 = vmatpush.msra.mxu0 %v900_v36 }
 0x10c   :  { %1116 = vmatpush.msra.mxu1 %v1776_v50  ;;  %1079 = vmatpush.msra.mxu0 %v906_v62 }
 0x10e   :  { %1118 = vmatpush.msra.mxu1 %v1810_v12  ;;  %1083 = vmatpush.msra.mxu0 %v912_v13 }
 0x110   :  { %1120 = vmatpush.msra.mxu1 %v1812_v63  ;;  %1087 = vmatpush.msra.mxu0 %v918_v23 }
 0x112   :  { %1122 = vmatpush.msra.mxu1 %v1863_v31  ;;  %1091 = vmatpush.msra.mxu0 %v924_v59 }
 0x114   :  { %1124 = vmatpush.msra.mxu1 %v1868_v29  ;;  %1095 = vmatpush.msra.mxu0 %v930_v2 }
 0x116   :  { %1126 = vmatpush.msra.mxu1 %v1876_v11 }
 0x118   :  { %1128 = vmatpush.msra.mxu1 %v1888_v49 }
 0x11a   :  { %1130 = vmatpush.msra.mxu1 %v825_v32 }
 0x11c   :  { %1132 = vmatpush.msra.mxu1 %v827_v16 }
 0x15f   :  { %v632_v41 = vpop.f32.mrf.mxu0 }
 0x161   :  { %v671_v44 = vpop.f32.mrf.mxu1 }
 0x163   :  { %v578_v4 = vpop.f32.mrf.mxu3 }
 0x16b   :  { %v477_v21 = vpop.f32.mrf.mxu2  ;;  %v777_v52 = vpop.f32.mrf.mxu3 }
 0x16c   :  { %v579_v34 = vadd.f32 %v578_v4, %v477_v21 }
 0x16e   :  { %v633_v9 = vadd.f32 %v632_v41, %v579_v34 }
 0x170   :  { %v672_v46 = vadd.f32 %v671_v44, %v633_v9 }
 0x173   :  { %v740_v57 = vpop.f32.mrf.mxu2 }
 0x174   :  { %v741_v61 = vadd.f32 %v740_v57, %v672_v46 }
 0x176   :  { %v778_v38 = vadd.f32 %v777_v52, %v741_v61 }
 0x178   :  { %1152 = vtanh.f32 %v778_v38 }
 0x17e   :  { %v1153_v17 = vpop.eup %1152 }
 0x17f   :  { %v829_v39 = vand.u32 4294901760, %v1153_v17 }
 0x181   :  { %935 = vmatmul.f32.vlgmr.msrb.gmra.mxu1 %v829_v39  ;;  %v830_v50 = vsub.f32 %v1153_v17, %v829_v39 }
 0x183   :  { %989 = vmatmul.f32.vlgmr.msrb.gmra.mxu2 %v830_v50  ;;  %v831_v47 = vand.u32 4294901760, %v830_v50 }
 0x185   :  { %1028 = vmatmul.f32.vlgmr.msrb.gmra.mxu3 %v831_v47  ;;  %v832_v14 = vsub.f32 %v830_v50, %v831_v47 }
 0x187   :  { %v833_v53 = vand.u32 4294901760, %v832_v14 }
 0x189   :  { %834 = vmatmul.f32.vlgmr.msrb.gmra.mxu0 %v833_v53  ;;  %1134 = vmatmul.f32.vlgmr.msra.gmra.mxu1 %v829_v39 }
 0x191   :  { %1097 = vmatmul.f32.vlgmr.msra.gmra.mxu0 %v829_v39 }
 0x1fe   :  { %v936_v37 = vpop.f32.mrf.mxu1 }
 0x206   :  { %v835_v43 = vpop.f32.mrf.mxu0  ;;  %v990_v45 = vpop.f32.mrf.mxu2 }
 0x207   :  { %v937_v3 = vadd.f32 %v936_v37, %v835_v43  ;;  %v1135_v26 = vpop.f32.mrf.mxu1 }
 0x208   :  { %v1029_v58 = vpop.f32.mrf.mxu3 }
 0x209   :  { %v991_v1 = vadd.f32 %v990_v45, %v937_v3 }
 0x20b   :  { %v1030_v12 = vadd.f32 %v1029_v58, %v991_v1 }
 0x20e   :  { %v1098_v63 = vpop.f32.mrf.mxu0 }
 0x20f   :  { %v1099_v18 = vadd.f32 %v1098_v63, %v1030_v12 }
 0x211   :  { %v1136_v0 = vadd.f32 %v1135_v26, %v1099_v18 }
 0x213   :  { %1138 = vst [vmem:[%s1943_s4] sm:$0xff] %v1136_v0 }
 0x214   :  { %1143 = vsyncpa [#allocation3], 1 }
 0x215   :  { %1144 = vsyncpa [#allocation5], 1 }

</bundles_post_ra>
